<compile_context>
chip_gen: v7x
topology: tpu7x:2x2x1
jax: 0.10.0
libtpu: 0.0.40
codegen_flags: <defaults>
</compile_context>

<pallas_src>
import jax
import jax.numpy as jnp
from jax.experimental import pallas as pl
from jax.experimental.pallas import tpu as pltpu


def _round_up(x: int, m: int) -> int:
    return ((x + m - 1) // m) * m


def blind_controller_kernel(u_ref, w1_ref, b1_ref, w2_ref, b2_ref, g_ref):
    # u_ref : (tb, 1)    -- self._u.unsqueeze(-1), one batch block
    # w1_ref: (1, H)     b1_ref: (1, H)    -- control = Linear(1, H) + ReLU
    # w2_ref: (H, Cp)    b2_ref: (1, Cp)   -- output  = Linear(H, C)
    u = u_ref[...]                                        # (tb, 1)
    # K=1 "matmul" == broadcasted outer product -> VPU, f32 on every chip gen.
    h = jnp.maximum(u * w1_ref[...] + b1_ref[...], 0.0)   # (tb, H) f32

    w2 = w2_ref[...]                                      # f32, or bf16 (pre-cast once)
    # Only the small activation is cast per step; weights were cast on host.
    g = jnp.dot(h.astype(w2.dtype), w2,
                preferred_element_type=jnp.float32) + b2_ref[...]
    g_ref[...] = g.astype(g_ref.dtype)                    # (tb, Cp) store


def prepare_params(w1, b1, w2, b2, *, use_bf16_mxu=False, pad_output_lanes=False):
    """One-time ("module init") parameter prep.

    w1: (1, H)  control = Linear(1, H) weight, applied as u @ w1
    b1: (H,)
    w2: (H, C)  output  = Linear(H, C) weight, applied as h @ w2
    b2: (C,)
    use_bf16_mxu     : explicit precision opt-in (changes numerics!); w2 is
                       pre-cast to bf16 once here, not per grid step.
    pad_output_lanes : zero-pad C to a multiple of 128 for unmasked stores —
                       only worth it if the consumer reads the padded layout.
    """
    w1 = jnp.asarray(w1, jnp.float32)
    w2 = jnp.asarray(w2, jnp.float32)
    H = w1.shape[-1]
    C = w2.shape[-1]
    Cp = _round_up(C, 128) if pad_output_lanes else C

    w1p = w1.reshape(1, H)
    b1p = jnp.asarray(b1, jnp.float32).reshape(1, H)
    w2p = jnp.zeros((H, Cp), jnp.float32).at[:, :C].set(w2)
    b2p = jnp.zeros((1, Cp), jnp.float32).at[:, :C].set(
        jnp.asarray(b2, jnp.float32).reshape(1, C))
    if use_bf16_mxu:
        w2p = w2p.astype(jnp.bfloat16)   # cast once here, not every grid step
    # C stays a static Python int; keep `params` static under jax.jit.
    return (w1p, b1p, w2p, b2p, C)


def blind_controller(u, params, *, block_b: int = 512, out_dtype=jnp.float32):
    """u: (B,) per-example control scalar. Returns gate matrix (B, C)."""
    w1p, b1p, w2p, b2p, C = params
    B = u.shape[0]
    H = w1p.shape[1]
    Cp = w2p.shape[1]
    out_isize = jnp.dtype(out_dtype).itemsize
    w2_isize = jnp.dtype(w2p.dtype).itemsize

    # ---- VMEM budget for the batch block ---------------------------------
    # single-buffered weights + double-buffered u/out blocks + f32
    # intermediates (h and pre-cast g); stay under v5e's 16 MiB scoped
    # default with headroom.
    w_bytes = 4 * (w1p.size + b1p.size + b2p.size) + w2_isize * w2p.size
    per_row = 2 * 4 + 2 * Cp * out_isize + 4 * H + 4 * Cp
    budget = 12 * 1024 * 1024
    tb_cap = max(8, ((budget - w_bytes) // max(per_row, 1)) // 8 * 8)
    max_tb = min(block_b, tb_cap)

    # ---- block count: bound batch padding to <8 rows/block, and force >=2
    # blocks for B>=16 so the "parallel" axis engages both v7x TensorCores.
    n_blocks = max(pl.cdiv(B, max_tb), 2 if B >= 16 else 1)
    tb = min(max_tb, _round_up(pl.cdiv(B, n_blocks), 8))
    Bp = _round_up(B, tb)

    u2 = jnp.asarray(u, jnp.float32).reshape(B, 1)        # .unsqueeze(-1)
    if Bp != B:
        u2 = jnp.pad(u2, ((0, Bp - B), (0, 0)))

    needed = w_bytes + tb * per_row
    vmem_limit = int(min(max(2 * needed, 8 << 20), 32 << 20))

    cost = pl.CostEstimate(
        flops=2 * Bp * H * Cp + 3 * Bp * H,
        transcendentals=0,
        bytes_accessed=(4 * Bp + 4 * (2 * H + Cp) + w2_isize * H * Cp
                        + out_isize * Bp * Cp),
    )

    weight_mode = pl.Buffered(1)   # constant index_map -> no double buffer
    gp = pl.pallas_call(
        blind_controller_kernel,
        out_shape=jax.ShapeDtypeStruct((Bp, Cp), out_dtype),
        grid_spec=pltpu.PrefetchScalarGridSpec(
            num_scalar_prefetch=0,
            grid=(Bp // tb,),
            in_specs=[
                pl.BlockSpec((tb, 1), lambda i: (i, 0)),       # u: pipelined per block
                pl.BlockSpec((1, H), lambda i: (0, 0), pipeline_mode=weight_mode),
                pl.BlockSpec((1, H), lambda i: (0, 0), pipeline_mode=weight_mode),
                pl.BlockSpec((H, Cp), lambda i: (0, 0), pipeline_mode=weight_mode),
                pl.BlockSpec((1, Cp), lambda i: (0, 0), pipeline_mode=weight_mode),
            ],
            out_specs=pl.BlockSpec((tb, Cp), lambda i: (i, 0)),
        ),
        compiler_params=pltpu.CompilerParams(
            dimension_semantics=("parallel",),                 # megacore shard on v7x
            vmem_limit_bytes=vmem_limit,
        ),
        cost_estimate=cost,
    )(u2, w1p, b1p, w2p, b2p)

    # Strip padding only if it exists (no-op slices avoided entirely).
    if Bp != B:
        gp = gp[:B]
    if Cp != C:
        gp = gp[:, :C]
    return gp


if __name__ == "__main__":
    B, H, C = 8, 32, 16   # batch, control-hidden width, gated components

    key = jax.random.PRNGKey(0)
    k_u, k_w1, k_b1, k_w2, k_b2 = jax.random.split(key, 5)

    # self._u : per-example scalar control parameter (set via set_control()).
    u = jax.random.uniform(k_u, (B,), dtype=jnp.float32)

    # Synthetic parameters for the control / output linears.
    w1 = jax.random.normal(k_w1, (1, H), dtype=jnp.float32) * 0.5
    b1 = jax.random.normal(k_b1, (H,), dtype=jnp.float32) * 0.1
    w2 = jax.random.normal(k_w2, (H, C), dtype=jnp.float32) * (1.0 / jnp.sqrt(H))
    b2 = jax.random.normal(k_b2, (C,), dtype=jnp.float32) * 0.1

    # One-time prep, out of the hot path (f32 path, no lane padding for C=16).
    params = prepare_params(w1, b1, w2, b2)
    g = blind_controller(u, params)
    g = jax.block_until_ready(g)

    # Pure-JAX reference of the same forward pass.
    h_ref = jnp.maximum(u[:, None] @ w1 + b1[None, :], 0.0)
    g_ref = h_ref @ w2 + b2[None, :]
    assert g.shape == (B, C)
    assert jnp.allclose(g, g_ref, atol=1e-5, rtol=1e-5), "mismatch vs reference"

    print("KERNEL_OK")
</pallas_src>

<mosaic_0001>
module attributes {stable_mosaic.version = 11 : i64} {
  func.func @blind_controller_kernel(%arg0: i32, %arg1: memref<8x1xf32, #tpu.memory_space<vmem>>, %arg2: memref<1x32xf32, #tpu.memory_space<vmem>>, %arg3: memref<1x32xf32, #tpu.memory_space<vmem>>, %arg4: memref<32x16xf32, #tpu.memory_space<vmem>>, %arg5: memref<1x16xf32, #tpu.memory_space<vmem>>, %arg6: memref<8x16xf32, #tpu.memory_space<vmem>>) attributes {dimension_semantics = [#tpu.dimension_semantics<parallel>], iteration_bounds = array<i64: 1>, scalar_prefetch = 0 : i64, scratch_operands = 0 : i64, tpu.core_type = #tpu.core_type<tc>, window_params = [{transform_indices = @transform_0, window_bounds = array<i64: 8, 1>}, {pipeline_mode = #tpu.pipeline_mode<synchronous>, transform_indices = @transform_1, window_bounds = array<i64: 1, 32>}, {pipeline_mode = #tpu.pipeline_mode<synchronous>, transform_indices = @transform_2, window_bounds = array<i64: 1, 32>}, {pipeline_mode = #tpu.pipeline_mode<synchronous>, transform_indices = @transform_3, window_bounds = array<i64: 32, 16>}, {pipeline_mode = #tpu.pipeline_mode<synchronous>, transform_indices = @transform_4, window_bounds = array<i64: 1, 16>}, {transform_indices = @transform_5, window_bounds = array<i64: 8, 16>}]} {
    %c0 = arith.constant 0 : index
    %c0_0 = arith.constant 0 : index
    %0 = vector.load %arg1[%c0, %c0_0] : memref<8x1xf32, #tpu.memory_space<vmem>>, vector<8x1xf32>
    %c0_1 = arith.constant 0 : index
    %c0_2 = arith.constant 0 : index
    %1 = vector.load %arg2[%c0_1, %c0_2] : memref<1x32xf32, #tpu.memory_space<vmem>>, vector<1x32xf32>
    %2 = vector.broadcast %0 : vector<8x1xf32> to vector<8x32xf32>
    %3 = vector.broadcast %1 : vector<1x32xf32> to vector<8x32xf32>
    %4 = arith.mulf %2, %3 : vector<8x32xf32>
    %c0_3 = arith.constant 0 : index
    %c0_4 = arith.constant 0 : index
    %5 = vector.load %arg3[%c0_3, %c0_4] : memref<1x32xf32, #tpu.memory_space<vmem>>, vector<1x32xf32>
    %6 = vector.broadcast %5 : vector<1x32xf32> to vector<8x32xf32>
    %7 = arith.addf %4, %6 : vector<8x32xf32>
    %cst = arith.constant 0.000000e+00 : f32
    %8 = vector.broadcast %cst : f32 to vector<8x32xf32>
    %9 = arith.maximumf %7, %8 : vector<8x32xf32>
    %c0_5 = arith.constant 0 : index
    %c0_6 = arith.constant 0 : index
    %10 = vector.load %arg4[%c0_5, %c0_6] : memref<32x16xf32, #tpu.memory_space<vmem>>, vector<32x16xf32>
    %cst_7 = arith.constant dense<0.000000e+00> : vector<8x16xf32>
    %11 = tpu.matmul %9, %10, %cst_7 {dimension_numbers = #tpu.dot_dimension_numbers<[1], [0], [0], [1], [0, 0, 1, 1], [], []>} : vector<8x32xf32>, vector<32x16xf32>, vector<8x16xf32> -> vector<8x16xf32>
    %c0_8 = arith.constant 0 : index
    %c0_9 = arith.constant 0 : index
    %12 = vector.load %arg5[%c0_8, %c0_9] : memref<1x16xf32, #tpu.memory_space<vmem>>, vector<1x16xf32>
    %13 = vector.broadcast %12 : vector<1x16xf32> to vector<8x16xf32>
    %14 = arith.addf %11, %13 : vector<8x16xf32>
    %c0_10 = arith.constant 0 : index
    %c0_11 = arith.constant 0 : index
    %15 = vector.load %arg6[%c0_10, %c0_11] : memref<8x16xf32, #tpu.memory_space<vmem>>, vector<8x16xf32>
    tpu.vector_store %arg6[%c0_10, %c0_11], %14 {strides = array<i32>} : memref<8x16xf32, #tpu.memory_space<vmem>>, vector<8x16xf32>,
    return
  }
  func.func @transform_0(%arg0: i32) -> (i32, i32) {
    %c0_i32 = arith.constant 0 : i32
    %c0_i32_0 = arith.constant 0 : i32
    return %arg0, %c0_i32 : i32, i32
  }
  func.func @transform_1(%arg0: i32) -> (i32, i32) {
    %c0_i32 = arith.constant 0 : i32
    %c0_i32_0 = arith.constant 0 : i32
    %c0_i32_1 = arith.constant 0 : i32
    return %c0_i32, %c0_i32_0 : i32, i32
  }
  func.func @transform_2(%arg0: i32) -> (i32, i32) {
    %c0_i32 = arith.constant 0 : i32
    %c0_i32_0 = arith.constant 0 : i32
    %c0_i32_1 = arith.constant 0 : i32
    return %c0_i32, %c0_i32_0 : i32, i32
  }
  func.func @transform_3(%arg0: i32) -> (i32, i32) {
    %c0_i32 = arith.constant 0 : i32
    %c0_i32_0 = arith.constant 0 : i32
    %c0_i32_1 = arith.constant 0 : i32
    return %c0_i32, %c0_i32_0 : i32, i32
  }
  func.func @transform_4(%arg0: i32) -> (i32, i32) {
    %c0_i32 = arith.constant 0 : i32
    %c0_i32_0 = arith.constant 0 : i32
    %c0_i32_1 = arith.constant 0 : i32
    return %c0_i32, %c0_i32_0 : i32, i32
  }
  func.func @transform_5(%arg0: i32) -> (i32, i32) {
    %c0_i32 = arith.constant 0 : i32
    %c0_i32_0 = arith.constant 0 : i32
    return %arg0, %c0_i32 : i32, i32
  }
}

</mosaic_0001>

<bundles_post_ra>
// kernel: tpu_custom_call.1
= control target key start
LH: loop header
LB: loop body
LE: loop exit
PB: predicated region body
PF: predicated region fallthrough
CT: control target
= control target key end

     0   :  { %v201_v3 = vmov 0   ;;  %v202_v4 = vmov 0.0|0.0   ;;  %s272_s0 = inlined_call_operand.vmem [shape: f32[8,1], index: 0, kind: input, shape index: {}]   ;;  %s273_s1 = inlined_call_operand.vmem [shape: f32[1,32], index: 1, kind: input, shape index: {}]   ;;  %s274_s2 = inlined_call_operand.vmem [shape: f32[1,32], index: 2, kind: input, shape index: {}]   ;;  %s275_s3 = inlined_call_operand.vmem [shape: f32[32,16], index: 3, kind: input, shape index: {}]   ;;  %s276_s4 = inlined_call_operand.vmem [shape: f32[1,16], index: 4, kind: input, shape index: {}]   ;;  %s277_s5 = inlined_call_operand.hbm [shape: f32[8,16], index: 5, kind: output, shape index: {}]  }
   0x1   :  { %v21_v0 = vld [vmem:[%s272_s0] sm:$0xff]  ;;  %v45_v2 = vld [vmem:[%s275_s3 + $0x8] sm:$0xff]  ;;  %176 = vset.pattern.permute.xlu0 %v201_v3  ;;  %165 = vmatprep.subr.bf16.mxu0 %v202_v4 }
   0x2   :  { %v44_v1 = vld [vmem:[%s275_s3] sm:$0xff] }
   0x3   :  { %v166_v5 = vpack.c.bf16 %v45_v2, %v44_v1 }
   0x4   :  { %10 = vsyncpa [#allocation3], 0  ;;  %25 = vperm.xlu0 %176, %v21_v0   ;;  %v46_v6 = vld [vmem:[%s275_s3 + $0x10] sm:$0xff]  ;;  %v47_v7 = vld [vmem:[%s275_s3 + $0x18] sm:$0xff]  ;;  %vm203_vm0 = vmmov 0   ;;  %v204_v9 = vmov 0.0  }
   0x5   :  { %167 = vmatpush3.bf16.msra.mxu0 %v166_v5  ;;  %v169_v8 = vpack.c.bf16 %v47_v7, %v46_v6  ;;  %162 = vmatprep.mubr.msk.f32.mxu0 %vm203_vm0, %v204_v9  ;;  %v145_v10 = vld [vmem:[%s273_s1] ss:$0 sm:$0xff]  ;;  %vm55_vm1 = vcmask 261120   ;;  %s205_s7 = smov [#allocation2]   ;;  %vm129_vm2 = vcmask 130048  }
   0x6   :  { %168 = vmatprep.subr.bf16.mxu0 %v202_v4  ;;  %v146_v11 = vld [vmem:[%s274_s2] ss:$0 sm:$0xff]  ;;  %s137_s8 = sshll.u32 %s205_s7, 4  ;;  %s138_s8 = int_to_ptr.vmem [resolvable:$true] %s137_s8 }
   0x7   :  { %v147_v16 = vld [vmem:[%s276_s4] ss:$0 sm:$0xff]  ;;  %s177_s1 = scalar_lea.vmem %s138_s8, 128  ;;  %p182_p1 = scmp.lt.s32.totalorder %s138_s8, %s138_s8 }
   0x8   :  { %p178_p0 = scmp.ne.s32.totalorder %s138_s8, %s177_s1  ;;  %p183_p2 = scmp.lt.s32.totalorder %s177_s1, %s177_s1 }
   0x9   :  { %170 = vmatpush3.bf16.msra.mxu0 %v169_v8 }
   0xa   :  { %p184_p3 = por %p183_p2, %p182_p1 }
   0xc   :  { %p185_p4 = pnand %p184_p3, %p178_p0 }
  0x83   :  { %v26_v12 = vpop.permute.xlu0 %25 }
  0x84   :  { %v34_v13 = vmul.f32 %v145_v10, %v26_v12 }
  0x86   :  { %v42_v14 = vadd.f32 %v146_v11, %v34_v13 }
  0x88   :  { %v43_v15 = vmax.f32 %v42_v14, 0.0 }
  0x8a   :  { %163 = vmatmul.mubr.msk.f32.vlgmr.msra.gmra.mrb[0].mxu0 %vm55_vm1, %v43_v15 }
 0x15d   :  { %v125_v17 = vpop.f32.mrb[0].mxu0 }
 0x15e   :  { %v126_v18 = vadd.f32 %v147_v16, %v125_v17  ;;  %v164_v19 = vpop.f32.mrb[1].mxu0 }
 0x160   :  { %130 = vst.msk [vmem:[#allocation2] sm:$0xff] %vm129_vm2, %v126_v18 }
 0x161   :  { %188 = shalt.err (!%p185_p4)
}
 0x162   :  { %s189_s10 = scalar_lea.hbm %s277_s5, 128 }
 0x163   :  { %p190_p5 = scmp.ne.s32.totalorder %s277_s5, %s189_s10  ;;  %p193_p6 = scmp.lt.u32.totalorder %s189_s10, %s277_s5 }
 0x165   :  { %p195_p7 = pnand %p193_p6, %p190_p5 }
 0x167   :  { %198 = shalt.err (!%p195_p7)
}
 0x168   :  { %140 = dma.vmem_to_hbm [thread:$0]  %s138_s8, 128, %s277_s5, [#allocation3]  }
 0x169   :  { %199 = dma.done.wait [#allocation3], 128  }
 0x16a   :  { %200 = vsyncadd [#allocation3], 4294967168 }
 0x16b   :  { %144 = vsyncpa [#allocation3], 1 }

</bundles_post_ra>
